<compile_context>
chip_gen: v5e
topology: v5e:2x2
jax: 0.10.0
libtpu: 0.0.40
codegen_flags: <defaults>
</compile_context>

<pallas_src>
import functools

import numpy as np
import jax
import jax.numpy as jnp
from jax import lax
from jax.experimental import pallas as pl
from jax.experimental.pallas import tpu as pltpu


# ----------------------------------------------------------------------------
# Host-side glue
# ----------------------------------------------------------------------------
def _round_up(x, m):
    return ((x + m - 1) // m) * m


def build_hann_window(fft_size):
    # deterministic stand-in for build_window(fft_size): periodic Hann window
    n = np.arange(fft_size)
    return (0.5 - 0.5 * np.cos(2.0 * np.pi * n / fft_size)).astype(np.float64)


def build_misi_matrices(fft_size, hop_size, n_frames, window):
    """Dense linear operators reproducing torch.istft / torch.stft semantics.

    Returns float32 matrices:
      a_re, a_im : (K, T)  complex spec (flattened k*n_frames+f) -> time signal
      t_re, t_im : (T, K)  time signal -> complex spec
    """
    N = fft_size
    n_bins = N // 2 + 1
    K = n_bins * n_frames
    T = (n_frames - 1) * hop_size          # torch.istft output length (center=True)
    pad = N // 2
    L = (n_frames - 1) * hop_size + N      # full overlap-add length

    w = np.asarray(window, dtype=np.float64)
    n = np.arange(N)
    k = np.arange(n_bins)
    ang = 2.0 * np.pi * np.outer(k, n) / N                 # (n_bins, N)

    # irfft basis (onesided, real output)
    c = np.full(n_bins, 2.0)
    c[0] = 1.0
    if N % 2 == 0:
        c[-1] = 1.0
    ir_cos = (c[:, None] * np.cos(ang)) / N
    ir_sin = -(c[:, None] * np.sin(ang)) / N

    # ---- ISTFT operator ----
    a_re = np.zeros((K, L))
    a_im = np.zeros((K, L))
    env = np.zeros(L)
    for f in range(n_frames):
        sl = slice(f * hop_size, f * hop_size + N)
        env[sl] += w * w
        for kk in range(n_bins):
            idx = kk * n_frames + f
            a_re[idx, sl] += ir_cos[kk] * w
            a_im[idx, sl] += ir_sin[kk] * w
    env_ret = env[pad:pad + T]
    # torch.istft raises if the window envelope has zeros (non-COLA setup)
    assert env_ret.min() > 1e-11, "window envelope has (near-)zeros; istft ill-defined"
    a_re = a_re[:, pad:pad + T] / env_ret
    a_im = a_im[:, pad:pad + T] / env_ret

    # ---- STFT operator (center=True, reflect padding) ----
    Lp = T + 2 * pad
    refl = np.zeros((T, Lp))
    for j in range(Lp):
        t = j - pad
        while t < 0 or t >= T:
            if t < 0:
                t = -t
            if t >= T:
                t = 2 * (T - 1) - t
        refl[t, j] = 1.0

    m_re = np.zeros((Lp, K))
    m_im = np.zeros((Lp, K))
    cosm = np.cos(ang)
    sinm = -np.sin(ang)
    for f in range(n_frames):
        sl = slice(f * hop_size, f * hop_size + N)
        for kk in range(n_bins):
            idx = kk * n_frames + f
            m_re[sl, idx] = w * cosm[kk]
            m_im[sl, idx] = w * sinm[kk]
    t_re = refl @ m_re
    t_im = refl @ m_im

    return (a_re.astype(np.float32), a_im.astype(np.float32),
            t_re.astype(np.float32), t_im.astype(np.float32))


def build_fused_operators(fft_size, hop_size, n_frames, window, K, T, Kp, Tp):
    """Fuse re/im operator pairs and zero-pad to lane/sublane-aligned sizes."""
    a_re, a_im, t_re, t_im = build_misi_matrices(fft_size, hop_size, n_frames, window)

    a_cat = np.zeros((2 * Kp, Tp), np.float32)       # [est_re | est_im] -> time
    a_cat[:K, :T] = a_re
    a_cat[Kp:Kp + K, :T] = a_im

    t_cat = np.zeros((Tp, 2 * Kp), np.float32)       # time -> [sp_re | sp_im]
    t_cat[:T, :K] = t_re
    t_cat[:T, Kp:Kp + K] = t_im
    return a_cat, t_cat


def _choose_batch_block(batch, n_sources):
    # Target ~256 matmul rows (Bblk * S) for MXU occupancy; keep Bblk a multiple
    # of 8 so in-kernel (S, Bblk, *) reshapes stay sublane-tile aligned.
    target_rows = 256
    bblk = max(8, (target_rows // max(n_sources, 1)) // 8 * 8)
    bblk = min(bblk, _round_up(batch, 8))
    return max(bblk, 8)


# ----------------------------------------------------------------------------
# Pallas kernel: full MISI iteration loop for a block of Bblk batches
# ----------------------------------------------------------------------------
def misi_kernel(mix_ref, amp_ref, a_ref, t_ref, out_ref,
                *, n_sources, bblk, kp, n_iter):
    S = n_sources
    Kp = kp
    M = S * bblk                       # matmul rows (source-major: row = s*bblk + b)
    Tp = a_ref.shape[1]

    mix = mix_ref[...]                 # (bblk, 2*Kp)  [mix_re | mix_im]
    amp = amp_ref[...]                 # (M, Kp)
    a_cat = a_ref[...]                 # (2*Kp, Tp)   ISTFT operator
    t_cat = t_ref[...]                 # (Tp, 2*Kp)   STFT operator

    # estimated_sources = amplitude * exp(i * angle(mixture))
    mix_re = mix[:, :Kp]
    mix_im = mix[:, Kp:]
    mmag2 = mix_re * mix_re + mix_im * mix_im
    mok = mmag2 > 0.0
    minv = lax.rsqrt(jnp.where(mok, mmag2, 1.0))
    cosm = jnp.where(mok, mix_re * minv, 1.0)        # (bblk, Kp); angle(0)=0
    sinm = jnp.where(mok, mix_im * minv, 0.0)

    amp3 = amp.reshape(S, bblk, Kp)                  # layout-free split of sublanes
    est_re = (amp3 * cosm[None]).reshape(M, Kp)
    est_im = (amp3 * sinm[None]).reshape(M, Kp)
    est = jnp.concatenate([est_re, est_im], axis=1)  # (M, 2*Kp), lane-aligned concat

    # mixture time-domain signal via fused ISTFT operator: (bblk, Tp)
    m_time = jnp.dot(mix, a_cat, preferred_element_type=jnp.float32)
    inv_s = jnp.float32(1.0 / S)

    def body(_, est_cur):
        # ISTFT of all sources: (M, Tp)
        y = jnp.dot(est_cur, a_cat, preferred_element_type=jnp.float32)
        # mixture-consistency projection (per batch, across sources)
        y3 = y.reshape(S, bblk, Tp)
        delta = (m_time - jnp.sum(y3, axis=0)) * inv_s       # (bblk, Tp)
        y = (y3 + delta[None]).reshape(M, Tp)
        # STFT back: (M, 2*Kp) = [sp_re | sp_im]
        sp = jnp.dot(y, t_cat, preferred_element_type=jnp.float32)
        sp_re = sp[:, :Kp]
        sp_im = sp[:, Kp:]
        # est = amplitude * exp(i * angle(sp))  (rsqrt-normalized, zero-safe)
        mag2 = sp_re * sp_re + sp_im * sp_im
        ok = mag2 > 0.0
        inv = lax.rsqrt(jnp.where(ok, mag2, 1.0))
        new_re = amp * jnp.where(ok, sp_re * inv, 1.0)
        new_im = amp * jnp.where(ok, sp_im * inv, 0.0)
        return jnp.concatenate([new_re, new_im], axis=1)

    est = lax.fori_loop(0, n_iter, body, est)
    out_ref[...] = est                                # (M, 2*Kp) lane-dense store


# ----------------------------------------------------------------------------
# Wrapper
# ----------------------------------------------------------------------------
def misi_forward(mixture_re, mixture_im, amplitude, *, fft_size, hop_size,
                 window, iteration=10):
    """
    mixture_re/im : (B, 1, n_bins, n_frames) float32  (complex mixture spectrogram)
    amplitude     : (B, S, n_bins, n_frames) float32
    returns (est_re, est_im), each (B, S, n_bins, n_frames) float32
    """
    B, S, n_bins, n_frames = amplitude.shape
    assert n_bins == fft_size // 2 + 1
    K = n_bins * n_frames
    T = (n_frames - 1) * hop_size
    Kp = _round_up(K, 128)
    Tp = _round_up(T, 128)

    bblk = _choose_batch_block(B, S)
    B_pad = _round_up(B, bblk)
    n_blocks = B_pad // bblk
    M = S * bblk

    a_np, t_np = build_fused_operators(fft_size, hop_size, n_frames, window,
                                       K, T, Kp, Tp)
    a_cat = jnp.asarray(a_np)
    t_cat = jnp.asarray(t_np)

    f32 = jnp.float32
    # amplitude -> source-major rows within each batch block: row = s*bblk + b
    amp = amplitude.reshape(B, S, K).astype(f32)
    amp = jnp.pad(amp, ((0, B_pad - B), (0, 0), (0, Kp - K)))
    amp = amp.reshape(n_blocks, bblk, S, Kp).transpose(0, 2, 1, 3)
    amp = amp.reshape(n_blocks * M, Kp)

    mix_re = jnp.pad(mixture_re.reshape(B, K).astype(f32),
                     ((0, B_pad - B), (0, Kp - K)))
    mix_im = jnp.pad(mixture_im.reshape(B, K).astype(f32),
                     ((0, B_pad - B), (0, Kp - K)))
    mix = jnp.concatenate([mix_re, mix_im], axis=1)          # (B_pad, 2*Kp)

    # Explicit VMEM budget: operators (double-buffered), i/o blocks, working set.
    op_bytes = (a_np.size + t_np.size) * 4
    blk_bytes = (bblk * 2 * Kp + M * Kp + M * 2 * Kp) * 4
    work_bytes = 12 * M * max(2 * Kp, Tp) * 4
    need = 2 * op_bytes + 2 * blk_bytes + work_bytes + (4 << 20)
    try:
        phys_vmem = int(getattr(pltpu.get_tpu_info(), "vmem_capacity_bytes",
                                64 << 20))
    except Exception:
        phys_vmem = 64 << 20                                  # v7x-safe fallback
    vmem_limit = int(min(max(need, 32 << 20), int(phys_vmem * 0.85)))

    kernel = functools.partial(misi_kernel, n_sources=S, bblk=bblk, kp=Kp,
                               n_iter=iteration)

    out = pl.pallas_call(
        kernel,
        out_shape=jax.ShapeDtypeStruct((n_blocks * M, 2 * Kp), jnp.float32),
        grid=(n_blocks,),
        in_specs=[
            pl.BlockSpec((bblk, 2 * Kp), lambda b: (b, 0)),   # mixture [re|im]
            pl.BlockSpec((M, Kp), lambda b: (b, 0)),          # amplitude
            pl.BlockSpec((2 * Kp, Tp), lambda b: (0, 0)),     # ISTFT operator (resident)
            pl.BlockSpec((Tp, 2 * Kp), lambda b: (0, 0)),     # STFT operator (resident)
        ],
        out_specs=pl.BlockSpec((M, 2 * Kp), lambda b: (b, 0)),
        compiler_params=pltpu.CompilerParams(
            dimension_semantics=("parallel",),
            vmem_limit_bytes=vmem_limit),
    )(mix, amp, a_cat, t_cat)

    # Undo the source-major block layout, strip padding, split re/im.
    out = out.reshape(n_blocks, S, bblk, 2 * Kp).transpose(0, 2, 1, 3)
    out = out.reshape(B_pad, S, 2 * Kp)[:B]
    est_re = out[:, :, :K].reshape(B, S, n_bins, n_frames)
    est_im = out[:, :, Kp:Kp + K].reshape(B, S, n_bins, n_frames)
    return est_re, est_im


if __name__ == "__main__":
    fft_size, hop_size = 16, 8
    B, S, n_frames = 2, 2, 9
    n_bins = fft_size // 2 + 1               # 9

    window = build_hann_window(fft_size)

    key = jax.random.PRNGKey(0)
    k1, k2, k3 = jax.random.split(key, 3)
    mixture_re = jax.random.normal(k1, (B, 1, n_bins, n_frames), dtype=jnp.float32)
    mixture_im = jax.random.normal(k2, (B, 1, n_bins, n_frames), dtype=jnp.float32)
    amplitude = jnp.abs(jax.random.normal(k3, (B, S, n_bins, n_frames),
                                          dtype=jnp.float32))

    est_re, est_im = misi_forward(mixture_re, mixture_im, amplitude,
                                  fft_size=fft_size, hop_size=hop_size,
                                  window=window, iteration=10)
    jax.block_until_ready((est_re, est_im))
    assert est_re.shape == (B, S, n_bins, n_frames)
    assert est_im.shape == (B, S, n_bins, n_frames)
    assert bool(jnp.all(jnp.isfinite(est_re))) and bool(jnp.all(jnp.isfinite(est_im)))
    print("KERNEL_OK")
</pallas_src>

<mosaic_0001>
module attributes {stable_mosaic.version = 11 : i64} {
  func.func @misi_kernel(%arg0: i32, %arg1: memref<8x256xf32, #tpu.memory_space<vmem>>, %arg2: memref<16x128xf32, #tpu.memory_space<vmem>>, %arg3: memref<256x128xf32, #tpu.memory_space<vmem>>, %arg4: memref<128x256xf32, #tpu.memory_space<vmem>>, %arg5: memref<16x256xf32, #tpu.memory_space<vmem>>) attributes {dimension_semantics = [#tpu.dimension_semantics<parallel>], iteration_bounds = array<i64: 1>, scalar_prefetch = 0 : i64, scratch_operands = 0 : i64, tpu.core_type = #tpu.core_type<tc>, window_params = [{transform_indices = @transform_0, window_bounds = array<i64: 8, 256>}, {transform_indices = @transform_1, window_bounds = array<i64: 16, 128>}, {pipeline_mode = #tpu.pipeline_mode<synchronous>, transform_indices = @transform_2, window_bounds = array<i64: 256, 128>}, {pipeline_mode = #tpu.pipeline_mode<synchronous>, transform_indices = @transform_3, window_bounds = array<i64: 128, 256>}, {transform_indices = @transform_4, window_bounds = array<i64: 16, 256>}]} {
    %c0 = arith.constant 0 : index
    %c0_0 = arith.constant 0 : index
    %0 = vector.load %arg1[%c0, %c0_0] : memref<8x256xf32, #tpu.memory_space<vmem>>, vector<8x256xf32>
    %c0_1 = arith.constant 0 : index
    %c0_2 = arith.constant 0 : index
    %1 = vector.load %arg2[%c0_1, %c0_2] : memref<16x128xf32, #tpu.memory_space<vmem>>, vector<16x128xf32>
    %c0_3 = arith.constant 0 : index
    %c0_4 = arith.constant 0 : index
    %2 = vector.load %arg3[%c0_3, %c0_4] : memref<256x128xf32, #tpu.memory_space<vmem>>, vector<256x128xf32>
    %c0_5 = arith.constant 0 : index
    %c0_6 = arith.constant 0 : index
    %3 = vector.load %arg4[%c0_5, %c0_6] : memref<128x256xf32, #tpu.memory_space<vmem>>, vector<128x256xf32>
    %4 = vector.extract_strided_slice %0 {offsets = [0, 0], sizes = [8, 128], strides = [1, 1]} : vector<8x256xf32> to vector<8x128xf32>
    %5 = vector.extract_strided_slice %0 {offsets = [0, 128], sizes = [8, 128], strides = [1, 1]} : vector<8x256xf32> to vector<8x128xf32>
    %6 = arith.mulf %4, %4 : vector<8x128xf32>
    %7 = arith.mulf %5, %5 : vector<8x128xf32>
    %8 = arith.addf %6, %7 : vector<8x128xf32>
    %cst = arith.constant 0.000000e+00 : f32
    %9 = vector.broadcast %cst : f32 to vector<8x128xf32>
    %10 = arith.cmpf ogt, %8, %9 : vector<8x128xf32>
    %cst_7 = arith.constant 1.000000e+00 : f32
    %11 = vector.broadcast %cst_7 : f32 to vector<8x128xf32>
    %12 = arith.select %10, %8, %11 : vector<8x128xi1>, vector<8x128xf32>
    %13 = math.rsqrt %12 : vector<8x128xf32>
    %14 = arith.mulf %4, %13 : vector<8x128xf32>
    %cst_8 = arith.constant 1.000000e+00 : f32
    %15 = vector.broadcast %cst_8 : f32 to vector<8x128xf32>
    %16 = arith.select %10, %14, %15 : vector<8x128xi1>, vector<8x128xf32>
    %17 = arith.mulf %5, %13 : vector<8x128xf32>
    %cst_9 = arith.constant 0.000000e+00 : f32
    %18 = vector.broadcast %cst_9 : f32 to vector<8x128xf32>
    %19 = arith.select %10, %17, %18 : vector<8x128xi1>, vector<8x128xf32>
    %20 = vector.shape_cast %1 : vector<16x128xf32> to vector<2x8x128xf32>
    %21 = vector.shape_cast %16 : vector<8x128xf32> to vector<1x8x128xf32>
    %22 = vector.broadcast %21 : vector<1x8x128xf32> to vector<2x8x128xf32>
    %23 = arith.mulf %20, %22 : vector<2x8x128xf32>
    %24 = vector.shape_cast %23 : vector<2x8x128xf32> to vector<16x128xf32>
    %25 = vector.shape_cast %19 : vector<8x128xf32> to vector<1x8x128xf32>
    %26 = vector.broadcast %25 : vector<1x8x128xf32> to vector<2x8x128xf32>
    %27 = arith.mulf %20, %26 : vector<2x8x128xf32>
    %28 = vector.shape_cast %27 : vector<2x8x128xf32> to vector<16x128xf32>
    %29 = tpu.concatenate %24, %28 in 1 : vector<16x128xf32>, vector<16x128xf32> -> vector<16x256xf32>
    %cst_10 = arith.constant dense<0.000000e+00> : vector<8x128xf32>
    %30 = tpu.matmul %0, %2, %cst_10 {dimension_numbers = #tpu.dot_dimension_numbers<[1], [0], [0], [1], [0, 0, 1, 1], [], []>} : vector<8x256xf32>, vector<256x128xf32>, vector<8x128xf32> -> vector<8x128xf32>
    %cst_11 = arith.constant 5.000000e-01 : f32
    %c0_i32 = arith.constant 0 : i32
    %c10_i32 = arith.constant 10 : i32
    %31 = arith.addi %c0_i32, %c10_i32 : i32
    %c1_i32 = arith.constant 1 : i32
    %32 = scf.for %arg6 = %c0_i32 to %31 step %c1_i32 iter_args(%arg7 = %29) -> (vector<16x256xf32>)  : i32 {
      %cst_14 = arith.constant dense<0.000000e+00> : vector<16x128xf32>
      %34 = tpu.matmul %arg7, %2, %cst_14 {dimension_numbers = #tpu.dot_dimension_numbers<[1], [0], [0], [1], [0, 0, 1, 1], [], []>} : vector<16x256xf32>, vector<256x128xf32>, vector<16x128xf32> -> vector<16x128xf32>
      %35 = vector.shape_cast %34 : vector<16x128xf32> to vector<2x8x128xf32>
      %cst_15 = arith.constant dense<0.000000e+00> : vector<8x128xf32>
      %36 = vector.multi_reduction <add>, %35, %cst_15 [0] : vector<2x8x128xf32> to vector<8x128xf32>
      %37 = arith.subf %30, %36 : vector<8x128xf32>
      %38 = vector.broadcast %cst_11 : f32 to vector<8x128xf32>
      %39 = arith.mulf %37, %38 : vector<8x128xf32>
      %40 = vector.shape_cast %39 : vector<8x128xf32> to vector<1x8x128xf32>
      %41 = vector.broadcast %40 : vector<1x8x128xf32> to vector<2x8x128xf32>
      %42 = arith.addf %35, %41 : vector<2x8x128xf32>
      %43 = vector.shape_cast %42 : vector<2x8x128xf32> to vector<16x128xf32>
      %cst_16 = arith.constant dense<0.000000e+00> : vector<16x256xf32>
      %44 = tpu.matmul %43, %3, %cst_16 {dimension_numbers = #tpu.dot_dimension_numbers<[1], [0], [0], [1], [0, 0, 1, 1], [], []>} : vector<16x128xf32>, vector<128x256xf32>, vector<16x256xf32> -> vector<16x256xf32>
      %45 = vector.extract_strided_slice %44 {offsets = [0, 0], sizes = [16, 128], strides = [1, 1]} : vector<16x256xf32> to vector<16x128xf32>
      %46 = vector.extract_strided_slice %44 {offsets = [0, 128], sizes = [16, 128], strides = [1, 1]} : vector<16x256xf32> to vector<16x128xf32>
      %47 = arith.mulf %45, %45 : vector<16x128xf32>
      %48 = arith.mulf %46, %46 : vector<16x128xf32>
      %49 = arith.addf %47, %48 : vector<16x128xf32>
      %cst_17 = arith.constant 0.000000e+00 : f32
      %50 = vector.broadcast %cst_17 : f32 to vector<16x128xf32>
      %51 = arith.cmpf ogt, %49, %50 : vector<16x128xf32>
      %cst_18 = arith.constant 1.000000e+00 : f32
      %52 = vector.broadcast %cst_18 : f32 to vector<16x128xf32>
      %53 = arith.select %51, %49, %52 : vector<16x128xi1>, vector<16x128xf32>
      %54 = math.rsqrt %53 : vector<16x128xf32>
      %55 = arith.mulf %45, %54 : vector<16x128xf32>
      %cst_19 = arith.constant 1.000000e+00 : f32
      %56 = vector.broadcast %cst_19 : f32 to vector<16x128xf32>
      %57 = arith.select %51, %55, %56 : vector<16x128xi1>, vector<16x128xf32>
      %58 = arith.mulf %1, %57 : vector<16x128xf32>
      %59 = arith.mulf %46, %54 : vector<16x128xf32>
      %cst_20 = arith.constant 0.000000e+00 : f32
      %60 = vector.broadcast %cst_20 : f32 to vector<16x128xf32>
      %61 = arith.select %51, %59, %60 : vector<16x128xi1>, vector<16x128xf32>
      %62 = arith.mulf %1, %61 : vector<16x128xf32>
      %63 = tpu.concatenate %58, %62 in 1 : vector<16x128xf32>, vector<16x128xf32> -> vector<16x256xf32>
      scf.yield %63 : vector<16x256xf32>
    }
    %c0_12 = arith.constant 0 : index
    %c0_13 = arith.constant 0 : index
    %33 = vector.load %arg5[%c0_12, %c0_13] : memref<16x256xf32, #tpu.memory_space<vmem>>, vector<16x256xf32>
    tpu.vector_store %arg5[%c0_12, %c0_13], %32 {strides = array<i32>} : memref<16x256xf32, #tpu.memory_space<vmem>>, vector<16x256xf32>,
    return
  }
  func.func @transform_0(%arg0: i32) -> (i32, i32) {
    %c0_i32 = arith.constant 0 : i32
    %c0_i32_0 = arith.constant 0 : i32
    return %arg0, %c0_i32 : i32, i32
  }
  func.func @transform_1(%arg0: i32) -> (i32, i32) {
    %c0_i32 = arith.constant 0 : i32
    %c0_i32_0 = arith.constant 0 : i32
    return %arg0, %c0_i32 : i32, i32
  }
  func.func @transform_2(%arg0: i32) -> (i32, i32) {
    %c0_i32 = arith.constant 0 : i32
    %c0_i32_0 = arith.constant 0 : i32
    %c0_i32_1 = arith.constant 0 : i32
    return %c0_i32, %c0_i32_0 : i32, i32
  }
  func.func @transform_3(%arg0: i32) -> (i32, i32) {
    %c0_i32 = arith.constant 0 : i32
    %c0_i32_0 = arith.constant 0 : i32
    %c0_i32_1 = arith.constant 0 : i32
    return %c0_i32, %c0_i32_0 : i32, i32
  }
  func.func @transform_4(%arg0: i32) -> (i32, i32) {
    %c0_i32 = arith.constant 0 : i32
    %c0_i32_0 = arith.constant 0 : i32
    return %arg0, %c0_i32 : i32, i32
  }
}

</mosaic_0001>

<bundles_post_ra>
// kernel: tpu_custom_call.1
= control target key start
LH: loop header
LB: loop body
LE: loop exit
PB: predicated region body
PF: predicated region fallthrough
CT: control target
= control target key end

     0   :  { %9 = vsyncpa [#allocation3], 0  ;;  %s967_s0 = inlined_call_operand.hbm [shape: f32[8,256], index: 0, kind: input, shape index: {}]   ;;  %s968_s1 = inlined_call_operand.hbm [shape: f32[16,128], index: 1, kind: input, shape index: {}]   ;;  %s969_s2 = inlined_call_operand.hbm [shape: f32[256,128], index: 2, kind: input, shape index: {}]   ;;  %s970_s3 = inlined_call_operand.hbm [shape: f32[128,256], index: 3, kind: input, shape index: {}]   ;;  %s971_s4 = inlined_call_operand.hbm [shape: f32[16,256], index: 4, kind: output, shape index: {}]  }
   0x1   :  { %10 = vsyncpa [#allocation6], 0 }
   0x2   :  { %11 = vsyncpa [#allocation9], 0  ;;  %s28_s17 = sshll.u32 %s968_s1, 4  ;;  %s29_s17 = int_to_ptr.hbm [resolvable:$true] %s28_s17 }
   0x3   :  { %12 = vsyncpa [#allocation4], 0  ;;  %s624_s18 = smov [#allocation5]   ;;  %s18_s22 = sshll.u32 %s967_s0, 4  ;;  %s19_s22 = int_to_ptr.hbm [resolvable:$true] %s18_s22 }
   0x4   :  { %s30_s19 = sshll.u32 %s624_s18, 4  ;;  %s625_s23 = smov 128   ;;  %s31_s19 = int_to_ptr.vmem [resolvable:$true] %s30_s19 }
   0x5   :  { %s626_s24 = smov 8   ;;  %s627_s25 = smov [#allocation2]  }
   0x6   :  { %36 = dma.hbm_to_vmem [thread:$0]  %s29_s17, 256, %s31_s19, [#allocation6], %s625_s23, %s625_s23, %s626_s24  }
   0x7   :  { %s20_s26 = sshll.u32 %s627_s25, 4  ;;  %s41_s29 = sshll.u32 %s969_s2, 4  ;;  %s21_s26 = int_to_ptr.vmem [resolvable:$true] %s20_s26  ;;  %s42_s29 = int_to_ptr.hbm [resolvable:$true] %s41_s29 }
   0x8   :  { %23 = dma.hbm_to_vmem [thread:$0]  %s19_s22, 256, %s21_s26, [#allocation3]  }
   0x9   :  { %s54_s5 = sshll.u32 %s970_s3, 4  ;;  %s628_s6 = smov [#allocation7]   ;;  %s55_s5 = int_to_ptr.hbm [resolvable:$true] %s54_s5 }
   0xa   :  { %s43_s7 = sshll.u32 %s628_s6, 4  ;;  %s629_s0 = smov [#allocation8]   ;;  %s44_s7 = int_to_ptr.vmem [resolvable:$true] %s43_s7 }
   0xb   :  { %49 = dma.hbm_to_vmem [thread:$0]  %s42_s29, 4096, %s44_s7, [#allocation6], %s625_s23, %s625_s23, %s626_s24  }
   0xc   :  { %s56_s8 = sshll.u32 %s629_s0, 4  ;;  %s630_s9 = smov 256   ;;  %s57_s8 = int_to_ptr.vmem [resolvable:$true] %s56_s8 }
   0xd   :  { %s631_s10 = smov 16  }
   0xe   :  { %62 = dma.hbm_to_vmem [thread:$0]  %s55_s5, 4096, %s57_s8, [#allocation9], %s630_s9, %s630_s9, %s631_s10  }
   0xf   :  { %596 = dma.done.wait [#allocation3], 256  }
  0x10   :  { %597 = vsyncadd [#allocation3], 4294967040 }
  0x11   :  { %598 = dma.done.wait [#allocation6], 4352  }
  0x12   :  { %599 = vsyncadd [#allocation6], 4294962944 }
  0x13   :  { %600 = dma.done.wait [#allocation9], 4096  }
  0x14   :  { %601 = vsyncadd [#allocation9], 4294963200  ;;  %v673_v0 = vld [vmem:[#allocation8] sm:$0xff]  ;;  %v675_v1 = vld [vmem:[#allocation8 + $0x8] sm:$0xff]  ;;  %s854_s2 = smov 0  }
  0x15   :  { %980 = vst [vmem:[#allocation15_spill] sm:$0xff] %v673_v0  ;;  %v677_v2 = vld [vmem:[#allocation8 + $0x10] sm:$0xff]  ;;  %v679_v3 = vld [vmem:[#allocation8 + $0x18] sm:$0xff]  ;;  %v681_v4 = vld [vmem:[#allocation8 + $0x20] sm:$0xff] }
  0x16   :  { %981 = vst [vmem:[#allocation16_spill] sm:$0xff] %v675_v1  ;;  %v683_v5 = vld [vmem:[#allocation8 + $0x28] sm:$0xff]  ;;  %v685_v6 = vld [vmem:[#allocation8 + $0x30] sm:$0xff]  ;;  %v687_v7 = vld [vmem:[#allocation8 + $0x38] sm:$0xff] }
  0x17   :  { %982 = vst [vmem:[#allocation17_spill] sm:$0xff] %v677_v2  ;;  %v689_v8 = vld [vmem:[#allocation8 + $0x40] sm:$0xff]  ;;  %v691_v9 = vld [vmem:[#allocation8 + $0x48] sm:$0xff]  ;;  %v693_v10 = vld [vmem:[#allocation8 + $0x50] sm:$0xff] }
  0x18   :  { %983 = vst [vmem:[#allocation18_spill] sm:$0xff] %v679_v3  ;;  %v695_v11 = vld [vmem:[#allocation8 + $0x58] sm:$0xff]  ;;  %v697_v12 = vld [vmem:[#allocation8 + $0x60] sm:$0xff]  ;;  %v699_v13 = vld [vmem:[#allocation8 + $0x68] sm:$0xff] }
  0x19   :  { %984 = vst [vmem:[#allocation19_spill] sm:$0xff] %v681_v4  ;;  %v701_v14 = vld [vmem:[#allocation8 + $0x70] sm:$0xff]  ;;  %v703_v15 = vld [vmem:[#allocation8 + $0x78] sm:$0xff]  ;;  %v705_v16 = vld [vmem:[#allocation8 + $0x80] sm:$0xff] }
  0x1a   :  { %985 = vst [vmem:[#allocation20_spill] sm:$0xff] %v683_v5  ;;  %v707_v17 = vld [vmem:[#allocation8 + $0x88] sm:$0xff]  ;;  %v709_v18 = vld [vmem:[#allocation8 + $0x90] sm:$0xff]  ;;  %v711_v19 = vld [vmem:[#allocation8 + $0x98] sm:$0xff] }
  0x1b   :  { %986 = vst [vmem:[#allocation21_spill] sm:$0xff] %v685_v6  ;;  %v713_v20 = vld [vmem:[#allocation8 + $0xa0] sm:$0xff]  ;;  %v715_v21 = vld [vmem:[#allocation8 + $0xa8] sm:$0xff]  ;;  %v717_v22 = vld [vmem:[#allocation8 + $0xb0] sm:$0xff] }
  0x1c   :  { %987 = vst [vmem:[#allocation22_spill] sm:$0xff] %v687_v7  ;;  %v719_v23 = vld [vmem:[#allocation8 + $0xb8] sm:$0xff]  ;;  %v721_v24 = vld [vmem:[#allocation8 + $0xc0] sm:$0xff]  ;;  %v723_v25 = vld [vmem:[#allocation8 + $0xc8] sm:$0xff] }
  0x1d   :  { %988 = vst [vmem:[#allocation23_spill] sm:$0xff] %v689_v8  ;;  %v725_v26 = vld [vmem:[#allocation8 + $0xd0] sm:$0xff]  ;;  %v727_v27 = vld [vmem:[#allocation8 + $0xd8] sm:$0xff]  ;;  %v729_v28 = vld [vmem:[#allocation8 + $0xe0] sm:$0xff] }
  0x1e   :  { %989 = vst [vmem:[#allocation24_spill] sm:$0xff] %v691_v9  ;;  %v731_v29 = vld [vmem:[#allocation8 + $0xe8] sm:$0xff]  ;;  %v733_v30 = vld [vmem:[#allocation8 + $0xf0] sm:$0xff]  ;;  %v735_v31 = vld [vmem:[#allocation8 + $0xf8] sm:$0xff] }
  0x1f   :  { %990 = vst [vmem:[#allocation25_spill] sm:$0xff] %v693_v10  ;;  %v737_v32 = vld [vmem:[#allocation7 + $0x78] sm:$0xff]  ;;  %v742_v34 = vld [vmem:[#allocation7 + $0x70] sm:$0xff]  ;;  %v747_v36 = vld [vmem:[#allocation7 + $0x68] sm:$0xff] }
  0x20   :  { %991 = vst [vmem:[#allocation26_spill] sm:$0xff] %v695_v11  ;;  %170 = vmatpush.msra.mxu0 %v737_v32  ;;  %v740_v33 = vld [vmem:[#allocation7 + $0xf8] sm:$0xff]  ;;  %v744_v35 = vld [vmem:[#allocation7 + $0xf0] sm:$0xff]  ;;  %v750_v37 = vld [vmem:[#allocation7 + $0xe8] sm:$0xff] }
  0x21   :  { %992 = vst [vmem:[#allocation27_spill] sm:$0xff] %v697_v12  ;;  %190 = vmatpush.msra.mxu1 %v740_v33  ;;  %v753_v38 = vld [vmem:[#allocation7 + $0x60] sm:$0xff]  ;;  %v759_v40 = vld [vmem:[#allocation7 + $0x58] sm:$0xff]  ;;  %v765_v42 = vld [vmem:[#allocation7 + $0x50] sm:$0xff] }
  0x22   :  { %993 = vst [vmem:[#allocation28_spill] sm:$0xff] %v699_v13  ;;  %171 = vmatpush.msra.mxu0 %v742_v34  ;;  %v756_v39 = vld [vmem:[#allocation7 + $0xe0] sm:$0xff]  ;;  %v762_v41 = vld [vmem:[#allocation7 + $0xd8] sm:$0xff]  ;;  %v768_v43 = vld [vmem:[#allocation7 + $0xd0] sm:$0xff] }
  0x23   :  { %994 = vst [vmem:[#allocation29_spill] sm:$0xff] %v701_v14  ;;  %191 = vmatpush.msra.mxu1 %v744_v35  ;;  %v771_v44 = vld [vmem:[#allocation7 + $0x48] sm:$0xff]  ;;  %v79_v46 = vld [vmem:[#allocation2] sm:$0xff]  ;;  %v783_v52 = vld [vmem:[#allocation7 + $0x38] sm:$0xff] }
  0x24   :  { %995 = vst [vmem:[#allocation30_spill] sm:$0xff] %v703_v15  ;;  %172 = vmatpush.msra.mxu0 %v747_v36  ;;  %v774_v45 = vld [vmem:[#allocation7 + $0xc8] sm:$0xff]  ;;  %v777_v48 = vld [vmem:[#allocation7 + $0x40] sm:$0xff]  ;;  %v147_v49 = vmul.f32 %v79_v46, %v79_v46  ;;  %v786_v54 = vld [vmem:[#allocation7 + $0xb8] sm:$0xff] }
  0x25   :  { %996 = vst [vmem:[#allocation31_spill] sm:$0xff] %v705_v16  ;;  %192 = vmatpush.msra.mxu1 %v750_v37  ;;  %v80_v47 = vld [vmem:[#allocation2 + $0x8] sm:$0xff]  ;;  %v780_v51 = vld [vmem:[#allocation7 + $0xc0] sm:$0xff]  ;;  %v789_v55 = vld [vmem:[#allocation7 + $0x30] sm:$0xff] }
  0x26   :  { %997 = vst [vmem:[#allocation32_spill] sm:$0xff] %v707_v17  ;;  %173 = vmatpush.msra.mxu0 %v753_v38  ;;  %v148_v50 = vmul.f32 %v80_v47, %v80_v47  ;;  %v792_v56 = vld [vmem:[#allocation7 + $0xb0] sm:$0xff]  ;;  %v796_v58 = vld [vmem:[#allocation7 + $0x28] sm:$0xff]  ;;  %v802_v60 = vld [vmem:[#allocation7 + $0x20] sm:$0xff] }
  0x27   :  { %193 = vmatpush.msra.mxu1 %v756_v39  ;;  %v799_v59 = vld [vmem:[#allocation7 + $0xa8] sm:$0xff]  ;;  %v805_v61 = vld [vmem:[#allocation7 + $0xa0] sm:$0xff]  ;;  %v808_v62 = vld [vmem:[#allocation7 + $0x18] sm:$0xff] }
  0x28   :  { %174 = vmatpush.msra.mxu0 %v759_v40  ;;  %v149_v53 = vadd.f32 %v148_v50, %v147_v49  ;;  %998 = vst [vmem:[#allocation33_spill] sm:$0xff] %v808_v62  ;;  %v811_v63 = vld [vmem:[#allocation7 + $0x98] sm:$0xff]  ;;  %v814_v50 = vld [vmem:[#allocation7 + $0x10] sm:$0xff]  ;;  %v820_v3 = vld [vmem:[#allocation7 + $0x8] sm:$0xff] }
  0x29   :  { %194 = vmatpush.msra.mxu1 %v762_v41  ;;  %999 = vst [vmem:[#allocation34_spill] sm:$0xff] %v811_v63  ;;  %v817_v1 = vld [vmem:[#allocation7 + $0x90] sm:$0xff]  ;;  %v823_v2 = vld [vmem:[#allocation7 + $0x88] sm:$0xff]  ;;  %v826_v4 = vld [vmem:[#allocation7] sm:$0xff] }
  0x2a   :  { %175 = vmatpush.msra.mxu0 %v765_v42  ;;  %vm150_vm0 = vcmp.gt.f32.partialorder %v149_v53, 0.0  ;;  %1000 = vst [vmem:[#allocation35_spill] sm:$0xff] %v814_v50  ;;  %v829_v7 = vld [vmem:[#allocation7 + $0x80] sm:$0xff] }
  0x2b   :  { %195 = vmatpush.msra.mxu1 %v768_v43  ;;  %v151_v57 = vsel %vm150_vm0, %v149_v53, 1.0  ;;  %1001 = vst [vmem:[#allocation36_spill] sm:$0xff] %v817_v1 }
  0x2c   :  { %176 = vmatpush.msra.mxu0 %v771_v44  ;;  %450 = vrsqrt.f32 %v151_v57  ;;  %1002 = vst [vmem:[#allocation37_spill] sm:$0xff] %v820_v3  ;;  %vm158_vm1 = vweird.f32 %v151_v57 }
  0x2d   :  { %196 = vmatpush.msra.mxu1 %v774_v45  ;;  %1003 = vst [vmem:[#allocation38_spill] sm:$0xff] %v823_v2 }
  0x2e   :  { %177 = vmatpush.msra.mxu0 %v777_v48  ;;  %1004 = vst [vmem:[#allocation39_spill] sm:$0xff] %v826_v4 }
  0x2f   :  { %197 = vmatpush.msra.mxu1 %v780_v51  ;;  %1005 = vst [vmem:[#allocation40_spill] sm:$0xff] %v829_v7 }
  0x30   :  { %178 = vmatpush.msra.mxu0 %v783_v52 }
  0x31   :  { %198 = vmatpush.msra.mxu1 %v786_v54 }
  0x32   :  { %179 = vmatpush.msra.mxu0 %v789_v55  ;;  %v451_v49 = vpop.eup %450 }
  0x33   :  { %199 = vmatpush.msra.mxu1 %v792_v56  ;;  %v153_v0 = vmul.f32 %v451_v49, %v151_v57  ;;  %vm159_vm2 = vweird.f32 %v451_v49 }
  0x34   :  { %180 = vmatpush.msra.mxu0 %v796_v58  ;;  %vm160_vm3 = vmor %vm158_vm1, %vm159_vm2 }
  0x35   :  { %200 = vmatpush.msra.mxu1 %v799_v59  ;;  %v154_v5 = vmul.f32 %v451_v49, %v153_v0 }
  0x36   :  { %181 = vmatpush.msra.mxu0 %v802_v60 }
  0x37   :  { %201 = vmatpush.msra.mxu1 %v805_v61  ;;  %v155_v6 = vmul.f32 0.5, %v154_v5 }
  0x38   :  { %182 = vmatpush.msra.mxu0 %v808_v62 }
  0x39   :  { %202 = vmatpush.msra.mxu1 %v811_v63  ;;  %v156_v63 = vsub.f32 1.5, %v155_v6 }
  0x3a   :  { %183 = vmatpush.msra.mxu0 %v814_v50  ;;  %v834_v50 = vld [vmem:[#allocation5] sm:$0xff] }
  0x3b   :  { %203 = vmatpush.msra.mxu1 %v817_v1  ;;  %v157_v0 = vmul.f32 %v451_v49, %v156_v63 }
  0x3c   :  { %184 = vmatpush.msra.mxu0 %v820_v3  ;;  %v836_v3 = vld [vmem:[#allocation5 + $0x8] sm:$0xff] }
  0x3d   :  { %204 = vmatpush.msra.mxu1 %v823_v2  ;;  %v161_v1 = vsel %vm160_vm3, %v451_v49, %v157_v0 }
  0x3e   :  { %185 = vmatpush.msra.mxu0 %v826_v4  ;;  %v162_v62 = vmul.f32 %v161_v1, %v79_v46  ;;  %v164_v5 = vmul.f32 %v161_v1, %v80_v47 }
  0x3f   :  { %205 = vmatpush.msra.mxu1 %v829_v7  ;;  %186 = vmatmul.f32.vlgmr.msra.gmra.mxu0 %v79_v46 }
  0x40   :  { %206 = vmatmul.f32.vlgmr.msra.gmra.mxu1 %v80_v47  ;;  %v163_v57 = vsel %vm150_vm0, %v162_v62, 1.0  ;;  %v165_v2 = vsel %vm150_vm0, %v164_v5, 0.0 }
  0x41   :  { %v166_v4 = vmul.f32 %v163_v57, %v834_v50   ;;  %v167_v6 = vmul.f32 %v163_v57, %v836_v3   ;;  %v168_v7 = vmul.f32 %v165_v2, %v834_v50   ;;  %v169_v63 = vmul.f32 %v165_v2, %v836_v3  }
  0xbc   :  { %v187_v9 = vpop.f32.mrf.mxu0 }
  0xbd   :  { %v207_v49 = vpop.f32.mrf.mxu1 }
  0xbe   :  { %v844_v0 = vadd.f32 %v207_v49, %v187_v9 }
  0xc0   :  { %1006 = vst [vmem:[#allocation41_spill] sm:$0xff] %v844_v0 }
  0xc1 LB: > { %220 = vmatpush.msra.mxu0 %v737_v32  ;;  %243 = vmatpush.msra.mxu1 %v740_v33  ;;  %v1007_v16 = vld [vmem:[#allocation31_spill] sm:$0xff]  ;;  %v1008_v17 = vld [vmem:[#allocation32_spill] sm:$0xff]  ;;  %v1009_v14 = vld [vmem:[#allocation29_spill] sm:$0xff]  ;;  %s215_s2 = sadd.s32 1, %s622_s2   ;;  %s622_s2 = sphi %s854_s2, %s215_s2   ;;  %v618_v4 = vphi %v166_v4, %v1037_v4   ;;  %v614_v7 = vphi %v168_v7, %v1036_v7   ;;  %v610_v6 = vphi %v167_v6, %v1035_v6   ;;  %v606_v63 = vphi %v169_v63, %v1034_v63  }
  0xc2   : > { %271 = vmatpush.msra.mxu2 %v733_v30  ;;  %294 = vmatpush.msra.mxu3 %v735_v31  ;;  %v1010_v15 = vld [vmem:[#allocation30_spill] sm:$0xff]  ;;  %v1011_v12 = vld [vmem:[#allocation27_spill] sm:$0xff]  ;;  %v1012_v13 = vld [vmem:[#allocation28_spill] sm:$0xff]  ;;  %p212_p0 = scmp.ge.s32.totalorder %s215_s2, 10  }
  0xc3   : > { %221 = vmatpush.msra.mxu0 %v742_v34  ;;  %244 = vmatpush.msra.mxu1 %v744_v35  ;;  %v1013_v10 = vld [vmem:[#allocation25_spill] sm:$0xff]  ;;  %v1014_v11 = vld [vmem:[#allocation26_spill] sm:$0xff]  ;;  %v1015_v8 = vld [vmem:[#allocation23_spill] sm:$0xff]  ;;  %s369_s12 = sshll.u32 (%p212_p0), %s971_s4, 4  ;;  %s632_s13 = smov (%p212_p0), [#allocation10]   ;;  %s370_s12 = int_to_ptr.hbm [resolvable:$true] %s369_s12 }
  0xc4   : > { %272 = vmatpush.msra.mxu2 %v729_v28  ;;  %295 = vmatpush.msra.mxu3 %v731_v29  ;;  %v1016_v1 = vld [vmem:[#allocation24_spill] sm:$0xff]  ;;  %v1017_v2 = vld [vmem:[#allocation33_spill] sm:$0xff]  ;;  %v1018_v9 = vld [vmem:[#allocation34_spill] sm:$0xff]  ;;  %s367_s14 = sshll.u32 (%p212_p0), %s632_s13, 4  ;;  %s368_s14 = int_to_ptr.vmem [resolvable:$true] %s367_s14 }
  0xc5   : > { %222 = vmatpush.msra.mxu0 %v747_v36  ;;  %245 = vmatpush.msra.mxu1 %v750_v37  ;;  %v1019_v46 = vld [vmem:[#allocation21_spill] sm:$0xff]  ;;  %v1020_v47 = vld [vmem:[#allocation22_spill] sm:$0xff]  ;;  %v1021_v53 = vld [vmem:[#allocation35_spill] sm:$0xff] }
  0xc6   : > { %273 = vmatpush.msra.mxu2 %v725_v26  ;;  %296 = vmatpush.msra.mxu3 %v727_v27  ;;  %v1022_v62 = vld [vmem:[#allocation36_spill] sm:$0xff]  ;;  %v1023_v5 = vld [vmem:[#allocation19_spill] sm:$0xff]  ;;  %v1025_v49 = vld [vmem:[#allocation37_spill] sm:$0xff] }
  0xc7   : > { %223 = vmatpush.msra.mxu0 %v753_v38  ;;  %246 = vmatpush.msra.mxu1 %v756_v39  ;;  %v1024_v57 = vld [vmem:[#allocation20_spill] sm:$0xff]  ;;  %v1033_v0 = vld [vmem:[#allocation41_spill] sm:$0xff] }
  0xc8   : > { %274 = vmatpush.msra.mxu2 %v721_v24  ;;  %297 = vmatpush.msra.mxu3 %v723_v25 }
  0xc9   : > { %224 = vmatpush.msra.mxu0 %v759_v40  ;;  %247 = vmatpush.msra.mxu1 %v762_v41 }
  0xca   : > { %275 = vmatpush.msra.mxu2 %v717_v22  ;;  %298 = vmatpush.msra.mxu3 %v719_v23 }
  0xcb   : > { %225 = vmatpush.msra.mxu0 %v765_v42  ;;  %248 = vmatpush.msra.mxu1 %v768_v43 }
  0xcc   : > { %276 = vmatpush.msra.mxu2 %v713_v20  ;;  %299 = vmatpush.msra.mxu3 %v715_v21 }
  0xcd   : > { %226 = vmatpush.msra.mxu0 %v771_v44  ;;  %249 = vmatpush.msra.mxu1 %v774_v45 }
  0xce   : > { %277 = vmatpush.msra.mxu2 %v709_v18  ;;  %300 = vmatpush.msra.mxu3 %v711_v19 }
  0xcf   : > { %227 = vmatpush.msra.mxu0 %v777_v48  ;;  %250 = vmatpush.msra.mxu1 %v780_v51 }
  0xd0   : > { %278 = vmatpush.msra.mxu2 %v1007_v16  ;;  %301 = vmatpush.msra.mxu3 %v1008_v17 }
  0xd1   : > { %228 = vmatpush.msra.mxu0 %v783_v52  ;;  %251 = vmatpush.msra.mxu1 %v786_v54 }
  0xd2   : > { %279 = vmatpush.msra.mxu2 %v1009_v14  ;;  %302 = vmatpush.msra.mxu3 %v1010_v15 }
  0xd3   : > { %229 = vmatpush.msra.mxu0 %v789_v55  ;;  %252 = vmatpush.msra.mxu1 %v792_v56 }
  0xd4   : > { %280 = vmatpush.msra.mxu2 %v1011_v12  ;;  %303 = vmatpush.msra.mxu3 %v1012_v13 }
  0xd5   : > { %230 = vmatpush.msra.mxu0 %v796_v58  ;;  %253 = vmatpush.msra.mxu1 %v799_v59 }
  0xd6   : > { %281 = vmatpush.msra.mxu2 %v1013_v10  ;;  %304 = vmatpush.msra.mxu3 %v1014_v11 }
  0xd7   : > { %231 = vmatpush.msra.mxu0 %v802_v60  ;;  %254 = vmatpush.msra.mxu1 %v805_v61 }
  0xd8   : > { %282 = vmatpush.msra.mxu2 %v1015_v8  ;;  %305 = vmatpush.msra.mxu3 %v1016_v1  ;;  %v1026_v8 = vld [vmem:[#allocation38_spill] sm:$0xff]  ;;  %v1027_v1 = vld [vmem:[#allocation17_spill] sm:$0xff] }
  0xd9   : > { %232 = vmatpush.msra.mxu0 %v1017_v2  ;;  %255 = vmatpush.msra.mxu1 %v1018_v9  ;;  %v1028_v2 = vld [vmem:[#allocation18_spill] sm:$0xff]  ;;  %v1029_v9 = vld [vmem:[#allocation39_spill] sm:$0xff] }
  0xda   : > { %283 = vmatpush.msra.mxu2 %v1019_v46  ;;  %306 = vmatpush.msra.mxu3 %v1020_v47  ;;  %v1030_v46 = vld [vmem:[#allocation40_spill] sm:$0xff]  ;;  %v1031_v47 = vld [vmem:[#allocation15_spill] sm:$0xff] }
  0xdb   : > { %233 = vmatpush.msra.mxu0 %v1021_v53  ;;  %256 = vmatpush.msra.mxu1 %v1022_v62  ;;  %v1032_v53 = vld [vmem:[#allocation16_spill] sm:$0xff] }
  0xdc   : > { %284 = vmatpush.msra.mxu2 %v1023_v5  ;;  %307 = vmatpush.msra.mxu3 %v1024_v57 }
  0xdd   : > { %234 = vmatpush.msra.mxu0 %v1025_v49  ;;  %257 = vmatpush.msra.mxu1 %v1026_v8 }
  0xde   : > { %285 = vmatpush.msra.mxu2 %v1027_v1  ;;  %308 = vmatpush.msra.mxu3 %v1028_v2 }
  0xdf   : > { %235 = vmatpush.msra.mxu0 %v1029_v9  ;;  %258 = vmatpush.msra.mxu1 %v1030_v46 }
  0xe0   : > { %236 = vmatmul.f32.vlgmr.msra.gmra.mxu0 %v618_v4  ;;  %259 = vmatmul.f32.vlgmr.msra.gmra.mxu1 %v614_v7 }
  0xe1   : > { %286 = vmatpush.msra.mxu2 %v1031_v47  ;;  %309 = vmatpush.msra.mxu3 %v1032_v53 }
  0xe8   : > { %239 = vmatmul.f32.gmra.mxu0 %v610_v6  ;;  %262 = vmatmul.f32.gmra.mxu1 %v606_v63 }
 0x15d   : > { %v237_v8 = vpop.f32.mrf.mxu0  ;;  %v260_v62 = vpop.f32.mrf.mxu1 }
 0x15e   : > { %v261_v49 = vadd.f32 %v260_v62, %v237_v8 }
 0x165   : > { %v240_v5 = vpop.f32.mrf.mxu0  ;;  %v263_v57 = vpop.f32.mrf.mxu1 }
 0x166   : > { %v264_v1 = vadd.f32 %v263_v57, %v240_v5 }
 0x168   : > { %v266_v2 = vadd.f32 %v264_v1, %v261_v49 }
 0x16a   : > { %v267_v9 = vsub.f32 %v1033_v0, %v266_v2 }
 0x16c   : > { %v268_v4 = vmul.f32 0.5, %v267_v9 }
 0x16e   : > { %v269_v46 = vadd.f32 %v268_v4, %v261_v49  ;;  %v270_v7 = vadd.f32 %v268_v4, %v264_v1 }
 0x170   : > { %287 = vmatmul.f32.vlgmr.msra.gmra.mxu2 %v269_v46  ;;  %310 = vmatmul.f32.vlgmr.msra.gmra.mxu3 %v269_v46 }
 0x178   : > { %290 = vmatmul.f32.gmra.mxu2 %v270_v7  ;;  %313 = vmatmul.f32.gmra.mxu3 %v270_v7 }
 0x1f3   : > { %v288_v47 = vpop.f32.mrf.mxu2  ;;  %v311_v6 = vpop.f32.mrf.mxu3 }
 0x1f4   : > { %v317_v53 = vmul.f32 %v288_v47, %v288_v47  ;;  %v319_v63 = vmul.f32 %v311_v6, %v311_v6 }
 0x1f6   : > { %v321_v10 = vadd.f32 %v319_v63, %v317_v53 }
 0x1f8   : > { %vm323_vm4 = vcmp.gt.f32.partialorder %v321_v10, 0.0 }
 0x1f9   : > { %v325_v11 = vsel %vm323_vm4, %v321_v10, 1.0 }
 0x1fa   : > { %452 = vrsqrt.f32 %v325_v11  ;;  %vm333_vm7 = vweird.f32 %v325_v11 }
 0x1fb   : > { %v291_v8 = vpop.f32.mrf.mxu2  ;;  %v314_v62 = vpop.f32.mrf.mxu3 }
 0x1fc   : > { %v318_v5 = vmul.f32 %v291_v8, %v291_v8  ;;  %v320_v57 = vmul.f32 %v314_v62, %v314_v62 }
 0x1fe   : > { %v322_v2 = vadd.f32 %v320_v57, %v318_v5 }
 0x200   : > { %v453_v49 = vpop.eup %452  ;;  %vm324_vm5 = vcmp.gt.f32.partialorder %v322_v2, 0.0 }
 0x201   : > { %v328_v9 = vmul.f32 %v453_v49, %v325_v11  ;;  %v326_v1 = vsel %vm324_vm5, %v322_v2, 1.0  ;;  %vm334_vm6 = vweird.f32 %v453_v49 }
 0x202   : > { %454 = vrsqrt.f32 %v326_v1  ;;  %vm335_vm8 = vmor %vm333_vm7, %vm334_vm6  ;;  %vm343_vm10 = vweird.f32 %v326_v1 }
 0x203   : > { %v329_v4 = vmul.f32 %v453_v49, %v328_v9 }
 0x205   : > { %v330_v46 = vmul.f32 0.5, %v329_v4 }
 0x207   : > { %v331_v7 = vsub.f32 1.5, %v330_v46 }
 0x208   : > { %v455_v53 = vpop.eup %454 }
 0x209   : > { %v332_v63 = vmul.f32 %v453_v49, %v331_v7  ;;  %v338_v0 = vmul.f32 %v455_v53, %v326_v1  ;;  %vm344_vm9 = vweird.f32 %v455_v53 }
 0x20a   : > { %vm345_vm11 = vmor %vm343_vm10, %vm344_vm9 }
 0x20b   : > { %v336_v12 = vsel %vm335_vm8, %v453_v49, %v332_v63  ;;  %v339_v13 = vmul.f32 %v455_v53, %v338_v0 }
 0x20c   : > { %v347_v14 = vmul.f32 %v336_v12, %v288_v47  ;;  %v353_v15 = vmul.f32 %v336_v12, %v311_v6 }
 0x20d   : > { %v340_v5 = vmul.f32 0.5, %v339_v13 }
 0x20e   : > { %v349_v57 = vsel %vm323_vm4, %v347_v14, 1.0  ;;  %v355_v16 = vsel %vm323_vm4, %v353_v15, 0.0 }
 0x20f   : > { %v351_v17 = vmul.f32 %v349_v57, %v834_v50   ;;  %v357_v9 = vmul.f32 %v355_v16, %v834_v50   ;;  %v341_v4 = vsub.f32 1.5, %v340_v5 }
 0x211   : > { %v342_v46 = vmul.f32 %v455_v53, %v341_v4  ;;  %v1037_v4 = vmov %v351_v17  ;;  %359 = vst [vmem:[#allocation10] sm:$0xff] (%p212_p0), %v351_v17 }
 0x212   :  { %360 = vst [vmem:[#allocation10 + $0x8] sm:$0xff] (%p212_p0), %v357_v9 }
 0x213   : > { %v346_v11 = vsel %vm345_vm11, %v455_v53, %v342_v46 }
 0x214   : > { %v348_v7 = vmul.f32 %v346_v11, %v291_v8  ;;  %v354_v49 = vmul.f32 %v346_v11, %v314_v62 }
 0x215   :  { %214 = sbr.rel (!%p212_p0) target bundleno = 193 (0xc1), region = 59 }
 0x216   : > { %v350_v0 = vsel %vm324_vm5, %v348_v7, 1.0  ;;  %v356_v12 = vsel %vm324_vm5, %v354_v49, 0.0  ;;  %v1036_v7 = vmov %v357_v9 }
 0x217   : > { %v352_v13 = vmul.f32 %v350_v0, %v836_v3   ;;  %v358_v10 = vmul.f32 %v356_v12, %v836_v3  }
 0x219   : > { %v1034_v63 = vmov %v358_v10  ;;  %v1035_v6 = vmov %v352_v13  ;;  %361 = vst [vmem:[#allocation10 + $0x10] sm:$0xff] (%p212_p0), %v352_v13 }
 0x21a   :  { %362 = vst [vmem:[#allocation10 + $0x18] sm:$0xff] %v358_v10 }
 0x21b   :  { %375 = dma.vmem_to_hbm [thread:$0]  %s368_s14, 512, %s370_s12, [#allocation4], %s630_s9, %s630_s9, %s631_s10  }
 0x21c   :  { %602 = dma.done.wait [#allocation4], 512  }
 0x21d   :  { %603 = vsyncadd [#allocation4], 4294966784 }
 0x21e   :  { %380 = vsyncpa [#allocation3], 1 }
 0x21f   :  { %381 = vsyncpa [#allocation6], 1 }
 0x220   :  { %382 = vsyncpa [#allocation9], 1 }
 0x221   :  { %383 = vsyncpa [#allocation4], 1 }

</bundles_post_ra>
